<compile_context>
chip_gen: v5e
topology: v5e:2x2
jax: 0.10.0
libtpu: 0.0.40
codegen_flags: <defaults>
</compile_context>

<pallas_src>
import jax
import jax.numpy as jnp
from jax import lax
from jax.experimental import pallas as pl
from jax.experimental.pallas import tpu as pltpu


def _round_up(x, m):
    return (x + m - 1) // m * m


def _vmem_capacity_bytes():
    """Physical VMEM per core; conservative 64 MiB (v7x) fallback."""
    try:
        return int(pltpu.get_tpu_info().vmem_capacity_bytes)
    except Exception:
        return 64 * 1024 * 1024


def _vmem_need_bytes(tl, th, c1, cout, m_rows, n_taps):
    """Rough VMEM footprint model for one grid step (double-buffered streams)."""
    b = 4
    c1p = _round_up(c1, 8)
    need = 2 * c1p * tl * b                         # current input tile (dbuf)
    need += 2 * c1p * th * b                        # halo tile (dbuf)
    need += 2 * _round_up(cout, 8) * tl * b         # y output tile (dbuf)
    need += 2 * 8 * tl * b                          # mask output tile (dbuf)
    need += n_taps * m_rows * max(_round_up(c1, 128), 128) * b   # weights
    need += 8 * 128 * b                             # bias
    need += (2 * c1p + m_rows) * (tl + th) * b      # in-kernel temporaries + acc
    return need


def _choose_lane_tile(l_out, th, c1, cout, m_rows, n_taps, n_batch, budget):
    """Largest lane tile (multiple of TH, <= 4096) that fits the VMEM budget."""
    useful = _round_up(max(l_out, 1), th)
    if n_batch == 1 and useful > th:
        # Guarantee >= 2 lane tiles so both v7x TensorCores get work.
        useful = _round_up(-(-l_out // 2), th)
    cap = min(useful, 4096)
    tl = th
    cand = th
    while cand <= cap:
        if _vmem_need_bytes(cand, th, c1, cout, m_rows, n_taps) <= budget:
            tl = cand
        cand += th
    return tl


def _make_pconv_kernel(tap_shifts, cout, cout_al):
    """Build the per-(batch, lane-tile) kernel.

    cur_ref : (C1, TL)  lane tile of the flattened padded input
              rows [0, Cin) = x*m, row Cin = sum_c m
    halo_ref: (C1, TH)  the next TH lanes (right halo for the tap shifts)
    w_ref   : (KH*KW, M_pad, C1) per-tap augmented weights:
              rows [0, Cout) = conv weight of that tap,
              row cout_al    = 1.0 in column Cin (all-ones mask conv)
    b_ref   : (Cout, 1) conv bias
    y_ref   : (Cout, TL) ; m_ref : (1, TL)
    """

    def kernel(cur_ref, halo_ref, w_ref, b_ref, y_ref, m_ref):
        cur = cur_ref[...]
        halo = halo_ref[...]
        tl = cur.shape[1]
        combined = jnp.concatenate([cur, halo], axis=1)       # (C1, TL + TH)

        acc = None
        for t_idx, d in enumerate(tap_shifts):                # static unroll
            rhs = cur if d == 0 else combined[:, d:d + tl]    # constant lane shift
            part = jnp.dot(w_ref[t_idx], rhs,
                           preferred_element_type=jnp.float32)
            acc = part if acc is None else acc + part

        conv = acc[:cout, :]                     # conv(x*m), no bias yet
        msum = acc[cout_al:cout_al + 1, :]       # mask_conv(m), aligned row

        pos = msum > 0.0
        zero = msum == 0.0
        # m_sum.masked_fill_(m_sum > 0, 1.0)  (in-place in the PyTorch module)
        m_out = jnp.where(pos, jnp.float32(1.0), msum)
        # y = (h - bias)/m_sum + bias with h = conv + bias  ->  conv/m_sum + bias
        denom = jnp.where(zero, jnp.float32(1.0), m_out)      # guard 0/0, masked next
        y = jnp.where(zero, jnp.float32(0.0), conv / denom + b_ref[...])

        y_ref[...] = y
        m_ref[...] = m_out

    return kernel


def pconv_pallas(x_nchw, m_nchw, weight_oihw, bias, *, stride=1, padding=1):
    """Partial convolution.  Inputs / outputs in NCHW (PyTorch convention)."""
    N, Cin, H, W = x_nchw.shape
    Cout, _, KH, KW = weight_oihw.shape
    if stride < 1:
        raise ValueError("stride must be >= 1")

    x = x_nchw.astype(jnp.float32)
    m = m_nchw.astype(jnp.float32)
    w = weight_oihw.astype(jnp.float32)
    b = bias.astype(jnp.float32)

    Hp, Wp = H + 2 * padding, W + 2 * padding
    Ho1, Wo1 = Hp - KH + 1, Wp - KW + 1          # stride-1 output extent
    C1 = Cin + 1
    KHW = KH * KW

    # Single fused input stream [x*m ; sum_c m], padded, flattened row-major so
    # each conv tap is a constant lane shift kh*Wp + kw.
    pad = ((0, 0), (0, 0), (padding, padding), (padding, padding))
    t = jnp.concatenate([x * m, jnp.sum(m, axis=1, keepdims=True)], axis=1)
    t = jnp.pad(t, pad).reshape(N, C1, Hp * Wp)

    shifts = [kh * Wp + kw for kh in range(KH) for kw in range(KW)]
    max_shift = shifts[-1]
    TH = max(128, _round_up(max_shift, 128))     # halo width (lane tile divisor)

    Cout_al = _round_up(Cout, 8)                 # sublane-aligned mask row
    M_pad = Cout_al + 8

    L_out = Ho1 * Wp                             # padded-width output plane, flat
    budget = min(int(0.6 * _vmem_capacity_bytes()), 40 * 1024 * 1024)
    TL = _choose_lane_tile(L_out, TH, C1, Cout, M_pad, KHW, N, budget)
    L_out_pad = _round_up(L_out, TL)             # lane-dense output length
    L_in_pad = L_out_pad + TL                    # last halo block always exists

    t = jnp.pad(t, ((0, 0), (0, 0), (0, L_in_pad - Hp * Wp)))

    # Per-tap augmented weights (conv rows + aligned all-ones mask-conv row).
    w_taps = jnp.zeros((KHW, M_pad, C1), jnp.float32)
    w_taps = w_taps.at[:, :Cout, :Cin].set(
        jnp.transpose(w, (2, 3, 0, 1)).reshape(KHW, Cout, Cin))
    w_taps = w_taps.at[:, Cout_al, Cin].set(1.0)
    b2d = b.reshape(Cout, 1)

    n_tiles = L_out_pad // TL
    r = TL // TH
    kernel = _make_pconv_kernel(tuple(shifts), Cout, Cout_al)

    vmem_need = _vmem_need_bytes(TL, TH, C1, Cout, M_pad, KHW)
    vmem_limit = int(min(0.9 * _vmem_capacity_bytes(),
                         max(2 * vmem_need, 32 * 1024 * 1024)))

    y_flat, m_flat = pl.pallas_call(
        kernel,
        out_shape=(
            jax.ShapeDtypeStruct((N, Cout, L_out_pad), jnp.float32),
            jax.ShapeDtypeStruct((N, 1, L_out_pad), jnp.float32),
        ),
        grid_spec=pltpu.PrefetchScalarGridSpec(
            num_scalar_prefetch=0,
            grid=(N, n_tiles),
            in_specs=[
                # current lane tile of the fused input
                pl.BlockSpec((None, C1, TL), lambda n, l: (n, 0, l)),
                # right halo: next TH lanes of the SAME array (TH | TL)
                pl.BlockSpec((None, C1, TH), lambda n, l: (n, 0, (l + 1) * r)),
                # per-tap augmented weights (resident)
                pl.BlockSpec((KHW, M_pad, C1), lambda n, l: (0, 0, 0)),
                # bias
                pl.BlockSpec((Cout, 1), lambda n, l: (0, 0)),
            ],
            out_specs=[
                pl.BlockSpec((None, Cout, TL), lambda n, l: (n, 0, l)),
                pl.BlockSpec((None, 1, TL), lambda n, l: (n, 0, l)),
            ],
        ),
        compiler_params=pltpu.CompilerParams(
            dimension_semantics=("parallel", "parallel"),
            vmem_limit_bytes=vmem_limit),
    )(t, t, w_taps, b2d)

    # Trim lane padding and the KW-1 wrapped garbage columns (cheap slices),
    # then apply stride by subsampling the stride-1 result (exact).
    y = y_flat[:, :, :L_out].reshape(N, Cout, Ho1, Wp)[:, :, :, :Wo1]
    mo = m_flat[:, :, :L_out].reshape(N, 1, Ho1, Wp)[:, :, :, :Wo1]
    if stride > 1:
        # TODO(synk): stride > 1 reuses the stride-1 kernel and subsamples;
        # a dedicated strided-output layout would avoid the s^2 extra compute.
        y = y[:, :, ::stride, ::stride]
        mo = mo[:, :, ::stride, ::stride]
    m_out = jnp.broadcast_to(mo, (N, Cout) + y.shape[2:])
    return y, m_out


def pconv_reference(x, m, weight_oihw, bias, *, stride=1, padding=1):
    """Pure-JAX reference mirroring the PyTorch forward exactly (NCHW)."""
    dn = lax.conv_dimension_numbers(x.shape, weight_oihw.shape,
                                    ("NCHW", "OIHW", "NCHW"))
    strides = (stride, stride)
    pads = ((padding, padding), (padding, padding))
    h = lax.conv_general_dilated(x * m, weight_oihw, strides, pads,
                                 dimension_numbers=dn,
                                 precision=lax.Precision.HIGHEST)
    h = h + bias.reshape(1, -1, 1, 1)
    ones_w = jnp.ones_like(weight_oihw)
    m_sum = lax.conv_general_dilated(m, ones_w, strides, pads,
                                     dimension_numbers=dn,
                                     precision=lax.Precision.HIGHEST)
    b = bias.reshape(1, -1, 1, 1)
    non_zero = m_sum > 0
    zero = m_sum == 0
    m_out = jnp.where(non_zero, 1.0, m_sum)          # in-place fill order reproduced
    y = (h - b) / jnp.where(zero, 1.0, m_out) + b    # NaN-safe; zero branch masked next
    y = jnp.where(zero, 0.0, y)
    return y, m_out


if __name__ == "__main__":
    # Small shapes consistent with the module.
    N, Cin, H, W = 2, 4, 16, 16
    Cout, K = 8, 3

    key = jax.random.PRNGKey(0)
    kx, km, kw, kb = jax.random.split(key, 4)

    x = jax.random.normal(kx, (N, Cin, H, W), dtype=jnp.float32)

    # Binary mask with a guaranteed all-zero region (exercises m_sum == 0).
    m_pix = (jax.random.uniform(km, (N, 1, H, W)) < 0.6).astype(jnp.float32)
    m_pix = m_pix.at[:, :, 4:10, 4:10].set(0.0)
    m = jnp.broadcast_to(m_pix, (N, Cin, H, W))

    # Deterministic Conv2d-like init (uniform in +/- 1/sqrt(fan_in)).
    fan_in = Cin * K * K
    bound = 1.0 / (fan_in ** 0.5)
    weight = jax.random.uniform(kw, (Cout, Cin, K, K), jnp.float32, -bound, bound)
    bias = jax.random.uniform(kb, (Cout,), jnp.float32, -bound, bound)

    for stride in (1, 2):
        y, m_out = pconv_pallas(x, m, weight, bias, stride=stride, padding=1)
        y, m_out = jax.block_until_ready((y, m_out))
        y_ref, m_ref = pconv_reference(x, m, weight, bias, stride=stride, padding=1)
        assert y.shape == y_ref.shape and m_out.shape == m_ref.shape
        assert jnp.allclose(y, y_ref, atol=2e-5, rtol=2e-5)
        assert jnp.allclose(m_out, m_ref, atol=1e-6, rtol=1e-6)

    print("KERNEL_OK")
</pallas_src>

<mosaic_0001>
module attributes {stable_mosaic.version = 11 : i64} {
  func.func @kernel(%arg0: i32, %arg1: i32, %arg2: memref<1x5x384xf32, #tpu.memory_space<vmem>>, %arg3: memref<1x5x128xf32, #tpu.memory_space<vmem>>, %arg4: memref<9x16x5xf32, #tpu.memory_space<vmem>>, %arg5: memref<8x1xf32, #tpu.memory_space<vmem>>, %arg6: memref<1x8x384xf32, #tpu.memory_space<vmem>>, %arg7: memref<1x1x384xf32, #tpu.memory_space<vmem>>) attributes {dimension_semantics = [#tpu.dimension_semantics<parallel>, #tpu.dimension_semantics<parallel>], iteration_bounds = array<i64: 2, 1>, scalar_prefetch = 0 : i64, scratch_operands = 0 : i64, tpu.core_type = #tpu.core_type<tc>, window_params = [{transform_indices = @transform_0, window_bounds = array<i64: 1, 5, 384>}, {transform_indices = @transform_1, window_bounds = array<i64: 1, 5, 128>}, {pipeline_mode = #tpu.pipeline_mode<synchronous>, transform_indices = @transform_2, window_bounds = array<i64: 9, 16, 5>}, {pipeline_mode = #tpu.pipeline_mode<synchronous>, transform_indices = @transform_3, window_bounds = array<i64: 8, 1>}, {transform_indices = @transform_4, window_bounds = array<i64: 1, 8, 384>}, {transform_indices = @transform_5, window_bounds = array<i64: 1, 1, 384>}]} {
    %c0 = arith.constant 0 : index
    %c0_0 = arith.constant 0 : index
    %c0_1 = arith.constant 0 : index
    %0 = vector.load %arg2[%c0, %c0_0, %c0_1] : memref<1x5x384xf32, #tpu.memory_space<vmem>>, vector<1x5x384xf32>
    %1 = vector.shape_cast %0 : vector<1x5x384xf32> to vector<5x384xf32>
    %c0_2 = arith.constant 0 : index
    %c0_3 = arith.constant 0 : index
    %c0_4 = arith.constant 0 : index
    %2 = vector.load %arg3[%c0_2, %c0_3, %c0_4] : memref<1x5x128xf32, #tpu.memory_space<vmem>>, vector<1x5x128xf32>
    %3 = vector.shape_cast %2 : vector<1x5x128xf32> to vector<5x128xf32>
    %4 = tpu.concatenate %1, %3 in 1 : vector<5x384xf32>, vector<5x128xf32> -> vector<5x512xf32>
    %c0_5 = arith.constant 0 : index
    %c0_6 = arith.constant 0 : index
    %c0_7 = arith.constant 0 : index
    %5 = vector.load %arg4[%c0_5, %c0_6, %c0_7] : memref<9x16x5xf32, #tpu.memory_space<vmem>>, vector<1x16x5xf32>
    %6 = vector.shape_cast %5 : vector<1x16x5xf32> to vector<16x5xf32>
    %cst = arith.constant dense<0.000000e+00> : vector<16x384xf32>
    %7 = tpu.matmul %6, %1, %cst {dimension_numbers = #tpu.dot_dimension_numbers<[1], [0], [0], [1], [0, 0, 1, 1], [], []>} : vector<16x5xf32>, vector<5x384xf32>, vector<16x384xf32> -> vector<16x384xf32>
    %8 = vector.extract_strided_slice %4 {offsets = [0, 1], sizes = [5, 384], strides = [1, 1]} : vector<5x512xf32> to vector<5x384xf32>
    %c1 = arith.constant 1 : index
    %c0_8 = arith.constant 0 : index
    %c0_9 = arith.constant 0 : index
    %9 = vector.load %arg4[%c1, %c0_8, %c0_9] : memref<9x16x5xf32, #tpu.memory_space<vmem>>, vector<1x16x5xf32>
    %10 = vector.shape_cast %9 : vector<1x16x5xf32> to vector<16x5xf32>
    %cst_10 = arith.constant dense<0.000000e+00> : vector<16x384xf32>
    %11 = tpu.matmul %10, %8, %cst_10 {dimension_numbers = #tpu.dot_dimension_numbers<[1], [0], [0], [1], [0, 0, 1, 1], [], []>} : vector<16x5xf32>, vector<5x384xf32>, vector<16x384xf32> -> vector<16x384xf32>
    %12 = arith.addf %7, %11 : vector<16x384xf32>
    %13 = vector.extract_strided_slice %4 {offsets = [0, 2], sizes = [5, 384], strides = [1, 1]} : vector<5x512xf32> to vector<5x384xf32>
    %c2 = arith.constant 2 : index
    %c0_11 = arith.constant 0 : index
    %c0_12 = arith.constant 0 : index
    %14 = vector.load %arg4[%c2, %c0_11, %c0_12] : memref<9x16x5xf32, #tpu.memory_space<vmem>>, vector<1x16x5xf32>
    %15 = vector.shape_cast %14 : vector<1x16x5xf32> to vector<16x5xf32>
    %cst_13 = arith.constant dense<0.000000e+00> : vector<16x384xf32>
    %16 = tpu.matmul %15, %13, %cst_13 {dimension_numbers = #tpu.dot_dimension_numbers<[1], [0], [0], [1], [0, 0, 1, 1], [], []>} : vector<16x5xf32>, vector<5x384xf32>, vector<16x384xf32> -> vector<16x384xf32>
    %17 = arith.addf %12, %16 : vector<16x384xf32>
    %18 = vector.extract_strided_slice %4 {offsets = [0, 18], sizes = [5, 384], strides = [1, 1]} : vector<5x512xf32> to vector<5x384xf32>
    %c3 = arith.constant 3 : index
    %c0_14 = arith.constant 0 : index
    %c0_15 = arith.constant 0 : index
    %19 = vector.load %arg4[%c3, %c0_14, %c0_15] : memref<9x16x5xf32, #tpu.memory_space<vmem>>, vector<1x16x5xf32>
    %20 = vector.shape_cast %19 : vector<1x16x5xf32> to vector<16x5xf32>
    %cst_16 = arith.constant dense<0.000000e+00> : vector<16x384xf32>
    %21 = tpu.matmul %20, %18, %cst_16 {dimension_numbers = #tpu.dot_dimension_numbers<[1], [0], [0], [1], [0, 0, 1, 1], [], []>} : vector<16x5xf32>, vector<5x384xf32>, vector<16x384xf32> -> vector<16x384xf32>
    %22 = arith.addf %17, %21 : vector<16x384xf32>
    %23 = vector.extract_strided_slice %4 {offsets = [0, 19], sizes = [5, 384], strides = [1, 1]} : vector<5x512xf32> to vector<5x384xf32>
    %c4 = arith.constant 4 : index
    %c0_17 = arith.constant 0 : index
    %c0_18 = arith.constant 0 : index
    %24 = vector.load %arg4[%c4, %c0_17, %c0_18] : memref<9x16x5xf32, #tpu.memory_space<vmem>>, vector<1x16x5xf32>
    %25 = vector.shape_cast %24 : vector<1x16x5xf32> to vector<16x5xf32>
    %cst_19 = arith.constant dense<0.000000e+00> : vector<16x384xf32>
    %26 = tpu.matmul %25, %23, %cst_19 {dimension_numbers = #tpu.dot_dimension_numbers<[1], [0], [0], [1], [0, 0, 1, 1], [], []>} : vector<16x5xf32>, vector<5x384xf32>, vector<16x384xf32> -> vector<16x384xf32>
    %27 = arith.addf %22, %26 : vector<16x384xf32>
    %28 = vector.extract_strided_slice %4 {offsets = [0, 20], sizes = [5, 384], strides = [1, 1]} : vector<5x512xf32> to vector<5x384xf32>
    %c5 = arith.constant 5 : index
    %c0_20 = arith.constant 0 : index
    %c0_21 = arith.constant 0 : index
    %29 = vector.load %arg4[%c5, %c0_20, %c0_21] : memref<9x16x5xf32, #tpu.memory_space<vmem>>, vector<1x16x5xf32>
    %30 = vector.shape_cast %29 : vector<1x16x5xf32> to vector<16x5xf32>
    %cst_22 = arith.constant dense<0.000000e+00> : vector<16x384xf32>
    %31 = tpu.matmul %30, %28, %cst_22 {dimension_numbers = #tpu.dot_dimension_numbers<[1], [0], [0], [1], [0, 0, 1, 1], [], []>} : vector<16x5xf32>, vector<5x384xf32>, vector<16x384xf32> -> vector<16x384xf32>
    %32 = arith.addf %27, %31 : vector<16x384xf32>
    %33 = vector.extract_strided_slice %4 {offsets = [0, 36], sizes = [5, 384], strides = [1, 1]} : vector<5x512xf32> to vector<5x384xf32>
    %c6 = arith.constant 6 : index
    %c0_23 = arith.constant 0 : index
    %c0_24 = arith.constant 0 : index
    %34 = vector.load %arg4[%c6, %c0_23, %c0_24] : memref<9x16x5xf32, #tpu.memory_space<vmem>>, vector<1x16x5xf32>
    %35 = vector.shape_cast %34 : vector<1x16x5xf32> to vector<16x5xf32>
    %cst_25 = arith.constant dense<0.000000e+00> : vector<16x384xf32>
    %36 = tpu.matmul %35, %33, %cst_25 {dimension_numbers = #tpu.dot_dimension_numbers<[1], [0], [0], [1], [0, 0, 1, 1], [], []>} : vector<16x5xf32>, vector<5x384xf32>, vector<16x384xf32> -> vector<16x384xf32>
    %37 = arith.addf %32, %36 : vector<16x384xf32>
    %38 = vector.extract_strided_slice %4 {offsets = [0, 37], sizes = [5, 384], strides = [1, 1]} : vector<5x512xf32> to vector<5x384xf32>
    %c7 = arith.constant 7 : index
    %c0_26 = arith.constant 0 : index
    %c0_27 = arith.constant 0 : index
    %39 = vector.load %arg4[%c7, %c0_26, %c0_27] : memref<9x16x5xf32, #tpu.memory_space<vmem>>, vector<1x16x5xf32>
    %40 = vector.shape_cast %39 : vector<1x16x5xf32> to vector<16x5xf32>
    %cst_28 = arith.constant dense<0.000000e+00> : vector<16x384xf32>
    %41 = tpu.matmul %40, %38, %cst_28 {dimension_numbers = #tpu.dot_dimension_numbers<[1], [0], [0], [1], [0, 0, 1, 1], [], []>} : vector<16x5xf32>, vector<5x384xf32>, vector<16x384xf32> -> vector<16x384xf32>
    %42 = arith.addf %37, %41 : vector<16x384xf32>
    %43 = vector.extract_strided_slice %4 {offsets = [0, 38], sizes = [5, 384], strides = [1, 1]} : vector<5x512xf32> to vector<5x384xf32>
    %c8 = arith.constant 8 : index
    %c0_29 = arith.constant 0 : index
    %c0_30 = arith.constant 0 : index
    %44 = vector.load %arg4[%c8, %c0_29, %c0_30] : memref<9x16x5xf32, #tpu.memory_space<vmem>>, vector<1x16x5xf32>
    %45 = vector.shape_cast %44 : vector<1x16x5xf32> to vector<16x5xf32>
    %cst_31 = arith.constant dense<0.000000e+00> : vector<16x384xf32>
    %46 = tpu.matmul %45, %43, %cst_31 {dimension_numbers = #tpu.dot_dimension_numbers<[1], [0], [0], [1], [0, 0, 1, 1], [], []>} : vector<16x5xf32>, vector<5x384xf32>, vector<16x384xf32> -> vector<16x384xf32>
    %47 = arith.addf %42, %46 : vector<16x384xf32>
    %48 = vector.extract_strided_slice %47 {offsets = [0, 0], sizes = [8, 384], strides = [1, 1]} : vector<16x384xf32> to vector<8x384xf32>
    %49 = vector.extract_strided_slice %47 {offsets = [8, 0], sizes = [1, 384], strides = [1, 1]} : vector<16x384xf32> to vector<1x384xf32>
    %cst_32 = arith.constant 0.000000e+00 : f32
    %50 = vector.broadcast %cst_32 : f32 to vector<1x384xf32>
    %51 = arith.cmpf ogt, %49, %50 : vector<1x384xf32>
    %cst_33 = arith.constant 0.000000e+00 : f32
    %52 = vector.broadcast %cst_33 : f32 to vector<1x384xf32>
    %53 = arith.cmpf oeq, %49, %52 : vector<1x384xf32>
    %cst_34 = arith.constant 1.000000e+00 : f32
    %54 = vector.broadcast %cst_34 : f32 to vector<1x384xf32>
    %55 = arith.select %51, %54, %49 : vector<1x384xi1>, vector<1x384xf32>
    %cst_35 = arith.constant 1.000000e+00 : f32
    %56 = vector.broadcast %cst_35 : f32 to vector<1x384xf32>
    %57 = arith.select %53, %56, %55 : vector<1x384xi1>, vector<1x384xf32>
    %58 = vector.broadcast %57 : vector<1x384xf32> to vector<8x384xf32>
    %59 = arith.divf %48, %58 : vector<8x384xf32>
    %c0_36 = arith.constant 0 : index
    %c0_37 = arith.constant 0 : index
    %60 = vector.load %arg5[%c0_36, %c0_37] : memref<8x1xf32, #tpu.memory_space<vmem>>, vector<8x1xf32>
    %61 = vector.broadcast %60 : vector<8x1xf32> to vector<8x384xf32>
    %62 = arith.addf %59, %61 : vector<8x384xf32>
    %cst_38 = arith.constant 0.000000e+00 : f32
    %63 = vector.shape_cast %53 : vector<1x384xi1> to vector<1x384xi1>
    %64 = vector.broadcast %63 : vector<1x384xi1> to vector<8x384xi1>
    %65 = vector.broadcast %cst_38 : f32 to vector<8x384xf32>
    %66 = arith.select %64, %65, %62 : vector<8x384xi1>, vector<8x384xf32>
    %c0_39 = arith.constant 0 : index
    %c0_40 = arith.constant 0 : index
    %c0_41 = arith.constant 0 : index
    %67 = vector.load %arg6[%c0_39, %c0_40, %c0_41] : memref<1x8x384xf32, #tpu.memory_space<vmem>>, vector<1x8x384xf32>
    %68 = vector.shape_cast %67 : vector<1x8x384xf32> to vector<8x384xf32>
    %69 = vector.shape_cast %66 : vector<8x384xf32> to vector<1x8x384xf32>
    tpu.vector_store %arg6[%c0_39, %c0_40, %c0_41], %69 {strides = array<i32>} : memref<1x8x384xf32, #tpu.memory_space<vmem>>, vector<1x8x384xf32>,
    %c0_42 = arith.constant 0 : index
    %c0_43 = arith.constant 0 : index
    %c0_44 = arith.constant 0 : index
    %70 = vector.load %arg7[%c0_42, %c0_43, %c0_44] : memref<1x1x384xf32, #tpu.memory_space<vmem>>, vector<1x1x384xf32>
    %71 = vector.shape_cast %70 : vector<1x1x384xf32> to vector<1x384xf32>
    %72 = vector.shape_cast %55 : vector<1x384xf32> to vector<1x1x384xf32>
    tpu.vector_store %arg7[%c0_42, %c0_43, %c0_44], %72 {strides = array<i32>} : memref<1x1x384xf32, #tpu.memory_space<vmem>>, vector<1x1x384xf32>,
    return
  }
  func.func @transform_0(%arg0: i32, %arg1: i32) -> (i32, i32, i32) {
    %c0_i32 = arith.constant 0 : i32
    %c0_i32_0 = arith.constant 0 : i32
    return %arg0, %c0_i32, %arg1 : i32, i32, i32
  }
  func.func @transform_1(%arg0: i32, %arg1: i32) -> (i32, i32, i32) {
    %c1_i32 = arith.constant 1 : i32
    %0 = arith.addi %arg1, %c1_i32 : i32
    %c3_i32 = arith.constant 3 : i32
    %1 = arith.muli %0, %c3_i32 : i32
    %c0_i32 = arith.constant 0 : i32
    %c0_i32_0 = arith.constant 0 : i32
    return %arg0, %c0_i32, %1 : i32, i32, i32
  }
  func.func @transform_2(%arg0: i32, %arg1: i32) -> (i32, i32, i32) {
    %c0_i32 = arith.constant 0 : i32
    %c0_i32_0 = arith.constant 0 : i32
    %c0_i32_1 = arith.constant 0 : i32
    %c0_i32_2 = arith.constant 0 : i32
    return %c0_i32, %c0_i32_0, %c0_i32_1 : i32, i32, i32
  }
  func.func @transform_3(%arg0: i32, %arg1: i32) -> (i32, i32) {
    %c0_i32 = arith.constant 0 : i32
    %c0_i32_0 = arith.constant 0 : i32
    %c0_i32_1 = arith.constant 0 : i32
    return %c0_i32, %c0_i32_0 : i32, i32
  }
  func.func @transform_4(%arg0: i32, %arg1: i32) -> (i32, i32, i32) {
    %c0_i32 = arith.constant 0 : i32
    %c0_i32_0 = arith.constant 0 : i32
    return %arg0, %c0_i32, %arg1 : i32, i32, i32
  }
  func.func @transform_5(%arg0: i32, %arg1: i32) -> (i32, i32, i32) {
    %c0_i32 = arith.constant 0 : i32
    %c0_i32_0 = arith.constant 0 : i32
    return %arg0, %c0_i32, %arg1 : i32, i32, i32
  }
}

</mosaic_0001>

<bundles_post_ra>
// kernel: tpu_custom_call.1
= control target key start
LH: loop header
LB: loop body
LE: loop exit
PB: predicated region body
PF: predicated region fallthrough
CT: control target
= control target key end

     0   :  { %11 = vsyncpa [#allocation3], 0  ;;  %s2238_s0 = inlined_call_operand.vmem [shape: f32[2,5,768], index: 0, kind: input, shape index: {}]   ;;  %s2239_s1 = inlined_call_operand.vmem [shape: f32[2,5,768], index: 1, kind: input, shape index: {}]   ;;  %s2240_s2 = inlined_call_operand.vmem [shape: f32[9,16,5], index: 2, kind: input, shape index: {}]   ;;  %s2241_s3 = inlined_call_operand.vmem [shape: f32[8,1], index: 3, kind: input, shape index: {}]   ;;  %s2242_s4 = inlined_call_operand.hbm [shape: f32[2,8,384], index: 4, kind: output, shape index: {0}]   ;;  %s2243_s5 = inlined_call_operand.hbm [shape: f32[2,1,384], index: 5, kind: output, shape index: {1}]  }
   0x1   :  { %13 = vsyncpa [#allocation3 + $0x1], 0 }
   0x2   :  { %14 = vsyncpa [#allocation5], 0 }
   0x3   :  { %16 = vsyncpa [#allocation5 + $0x1], 0  ;;  %s1829_s18 = smov 0   ;;  %s1831_s19 = smov 0  }
   0x4   :  { %s1833_s20 = smov 0   ;;  %s1835_s21 = smov 0  }
   0x5   :  { %s1837_s22 = smov 0   ;;  %s1839_s23 = smov 0  }
   0x6 LB: > { %s1484_s24 = sadd.s32 4294967295, %s1788_s23   ;;  %s1485_s25 = sadd.s32 4294967294, %s1788_s23   ;;  %s1788_s23 = sphi %s1839_s23, %s22_s23   ;;  %s1784_s22 = sphi %s1837_s22, %s2252_s22   ;;  %s1780_s21 = sphi %s1835_s21, %s2251_s21   ;;  %s1776_s20 = sphi %s1833_s20, %s2250_s20   ;;  %s1772_s19 = sphi %s1831_s19, %s2249_s19   ;;  %s1768_s18 = sphi %s1829_s18, %s2248_s18  }
   0x7   : > { %s34_s26 = sadd.s32 1, %s1784_s22  ;;  %s145_s27 = sadd.s32 1, %s1776_s20 }
   0x8   : > { %p36_p0 = scmp.ge.s32.totalorder %s34_s26, 2  ;;  %p155_p1 = scmp.ne.s32.totalorder %s1776_s20, %s1772_s19 }
   0x9   : > { %p156_p2 = scmp.eq.s32.totalorder %s1484_s24, 1  ;;  %p161_p3 = scmp.ne.s32.totalorder %s1772_s19, %s1768_s18 }
   0xa   : > { %s2254_s26 = smov (%p36_p0, %s34_s26), 0  ;;  %p162_p5 = scmp.eq.s32.totalorder %s1485_s25, 1 }
   0xb   : > { %p1869_p4 = por %p156_p2, %p155_p1  ;;  %s140_s29 = ssub.s32 %s1784_s22, %s2254_s26 }
   0xc   : > { %p1488_p6 = scmp.ge.s32.totalorder %s1788_s23, 1  ;;  %p143_p7 = scmp.eq.s32.totalorder %s140_s29, 0 }
   0xd   : > { %p1876_p8 = por %p162_p5, %p161_p3  ;;  %p242_p9 = scmp.lt.s32.totalorder %s1788_s23, 3 }
   0xe   : > { %s1882_s6 = scalar_select %p143_p7, %s1776_s20, %s145_s27  }
   0xf   : > { %p243_p10 = pnand %p1488_p6, %p242_p9 }
  0x10   : > { %p290_p11 = scmp.lt.s32.totalorder (!%p243_p10), %s1780_s21, 1  ;;  %s1790_s13 = smov (!%p243_p10), 127  }
  0x11   : > { %246 = sbr.rel (%p243_p10) target bundleno = 424 (0x1a8), region = 36  ;;  %s1791_s14 = smov (!%p243_p10), 126  }
  0x12   : > { %s1792_s24 = smov (!%p243_p10), 110   ;;  %s1793_s25 = smov (!%p243_p10), 109  }
  0x13   : > { %s1794_s27 = smov (!%p243_p10), 108   ;;  %s1795_s29 = smov (!%p243_p10), 92  }
  0x16   : > { %s291_s7 = scalar_select %p290_p11, %s1780_s21, 1  ;;  %vm334_vm0 = vcmask 1039360   ;;  %vm345_vm1 = vcmask 1044480   ;;  %vm513_vm2 = vcmask 1031168   ;;  %v1491_v15 = vld [vmem:[%s2240_s2 + $0x10] sm:$0xff]  ;;  %vm338_vm3 = vcmask 39936  }
  0x17   : > { %v1492_v16 = vld [vmem:[%s2240_s2 + $0x18] sm:$0xff]  ;;  %vm615_vm4 = vcmask 900096   ;;  %v317_v22 = vld [vmem:[%s2240_s2] sm:$0xff]  ;;  %v318_v29 = vld [vmem:[%s2240_s2 + $0x8] sm:$0xff]  ;;  %vm717_vm5 = vcmask 891904   ;;  %vm819_vm6 = vcmask 883712  }
  0x18   : > { %s1596_s8 = smul.u32 48, %s291_s7  ;;  %s1796_s7 = smov 91   ;;  %v1511_v30 = vld [vmem:[%s2240_s2 + $0x20] sm:$0xff]  ;;  %v1512_v35 = vld [vmem:[%s2240_s2 + $0x28] sm:$0xff]  ;;  %v1522_v43 = vld [vmem:[%s2240_s2 + $0x30] sm:$0xff]  ;;  %vm921_vm7 = vcmask 752640  }
  0x19   : > { %v1533_v48 = vld [vmem:[%s2240_s2 + $0x40] sm:$0xff]  ;;  %v1523_v49 = vld [vmem:[%s2240_s2 + $0x38] sm:$0xff]  ;;  %vm1023_vm8 = vcmask 744448   ;;  %v1534_v55 = vld [vmem:[%s2240_s2 + $0x48] sm:$0xff]  ;;  %vm1125_vm9 = vcmask 736256   ;;  %vm1305_vm14 = vcmask 1040384  }
  0x1a   : > { %s297_s11 = scalar_lea.vmem %s2238_s0, %s1596_s8  ;;  %s1592_s12 = sadd.s32 24, %s1596_s8  ;;  %v1544_v60 = vld [vmem:[%s2240_s2 + $0x50] sm:$0xff] }
  0x1b   : > { %v1889_v0 = vld [vmem:[%s297_s11 + $0x10] sm:$0x1f]  ;;  %v1891_v1 = vld [vmem:[%s297_s11] sm:$0x1f]  ;;  %s308_s17 = scalar_lea.vmem %s2239_s1, %s1592_s12  ;;  %v1899_v3 = vld [vmem:[%s297_s11 + $0x8] sm:$0x1f] }
  0x1c   : > { %330 = vrot.lane.b32.xlu0 %v1889_v0, %s1790_s13  ;;  %326 = vrot.lane.b32.xlu1 %v1891_v1, %s1790_s13  ;;  %v316_v2 = vld [vmem:[%s308_s17] sm:$0x1f]  ;;  %s1797_s8 = smov 90   ;;  %s2109_s17 = sand.u32 1, %s1772_s19  }
  0x1d   : > { %505 = vrot.lane.b32.xlu2 %v1891_v1, %s1791_s14  ;;  %s1594_s11 = smul.u32 24, %s2109_s17  ;;  %s1321_s12 = scalar_lea.sflag [#allocation5], %s2109_s17 }
  0x24   : > { %332 = vrot.lane.b32.xlu0 %v316_v2, %s1790_s13  ;;  %328 = vrot.lane.b32.xlu1 %v1899_v3, %s1790_s13 }
  0x25   : > { %507 = vrot.lane.b32.xlu2 %v1899_v3, %s1791_s14 }
  0x2c   : > { %509 = vrot.lane.b32.xlu0 %v1889_v0, %s1791_s14  ;;  %609 = vrot.lane.b32.xlu1 %v1899_v3, %s1792_s24 }
  0x2d   : > { %611 = vrot.lane.b32.xlu2 %v1889_v0, %s1792_s24 }
  0x34   : > { %511 = vrot.lane.b32.xlu0 %v316_v2, %s1791_s14  ;;  %607 = vrot.lane.b32.xlu1 %v1891_v1, %s1792_s24 }
  0x35   : > { %613 = vrot.lane.b32.xlu2 %v316_v2, %s1792_s24  ;;  %s1599_s24 = smul.u32 3, %s1780_s21 }
  0x3c   : > { %713 = vrot.lane.b32.xlu0 %v1889_v0, %s1793_s25  ;;  %715 = vrot.lane.b32.xlu1 %v316_v2, %s1793_s25 }
  0x3d   : > { %709 = vrot.lane.b32.xlu2 %v1891_v1, %s1793_s25 }
  0x44   : > { %711 = vrot.lane.b32.xlu0 %v1899_v3, %s1793_s25  ;;  %811 = vrot.lane.b32.xlu1 %v1891_v1, %s1794_s27  ;;  %s1595_s25 = smul.u32 3, %s2109_s17 }
  0x45   : > { %813 = vrot.lane.b32.xlu2 %v1899_v3, %s1794_s27 }
  0x4c   : > { %913 = vrot.lane.b32.xlu0 %v1891_v1, %s1795_s29  ;;  %915 = vrot.lane.b32.xlu1 %v1899_v3, %s1795_s29 }
  0x4d   : > { %815 = vrot.lane.b32.xlu2 %v1889_v0, %s1794_s27 }
  0x54   : > { %817 = vrot.lane.b32.xlu0 %v316_v2, %s1794_s27  ;;  %917 = vrot.lane.b32.xlu1 %v1889_v0, %s1795_s29 }
  0x55   : > { %1017 = vrot.lane.b32.xlu2 %v1899_v3, %s1796_s7 }
  0x5c   : > { %1019 = vrot.lane.b32.xlu0 %v1889_v0, %s1796_s7  ;;  %919 = vrot.lane.b32.xlu1 %v316_v2, %s1795_s29 }
  0x5d   : > { %1015 = vrot.lane.b32.xlu2 %v1891_v1, %s1796_s7 }
  0x64   : > { %1021 = vrot.lane.b32.xlu0 %v316_v2, %s1796_s7  ;;  %1121 = vrot.lane.b32.xlu1 %v1889_v0, %s1797_s8  ;;  %s1350_s7 = scalar_lea.hbm %s2243_s5, %s1599_s24  ;;  %s1698_s24 = scalar_lea.hbm %s2243_s5, 6 }
  0x65   : > { %1123 = vrot.lane.b32.xlu2 %v316_v2, %s1797_s8  ;;  %v1545_v2 = vld [vmem:[%s2240_s2 + $0x58] sm:$0xff]  ;;  %s1354_s10 = sshll.u32 %s1350_s7, 4  ;;  %s2143_s10 = int_to_ptr.hbm [resolvable:$true] %s1354_s10 }
  0x66   : > { %s1692_s13 = sshra.s32 %s2143_s10, 4  ;;  %s1693_s13 = int_to_ptr.hbm [resolvable:$true] %s1692_s13 }
  0x67   : > { %s1694_s14 = scalar_lea.hbm %s1693_s13, 3  ;;  %p1699_p1 = scmp.lt.s32.totalorder %s1693_s13, %s2243_s5 }
  0x68   : > { %p1695_p12 = scmp.ne.s32.totalorder %s1693_s13, %s1694_s14  ;;  %p1700_p2 = scmp.lt.s32.totalorder %s1698_s24, %s1694_s14 }
  0x6a   : > { %p1696_p13 = pnand %p1695_p12, %p1869_p4  ;;  %p1701_p3 = por %p1700_p2, %p1699_p1 }
  0x6c   : > { %1119 = vrot.lane.b32.xlu1 %v1899_v3, %s1797_s8  ;;  %1117 = vrot.lane.b32.xlu0 %v1891_v1, %s1797_s8  ;;  %s288_s8 = scalar_lea.vmem [#allocation4], %s1595_s25  ;;  %p1697_p0 = pneg %p1696_p13 }
  0x6d   : > { %s1352_s9 = sshll.u32 %s288_s8, 4  ;;  %s2141_s9 = int_to_ptr.vmem [resolvable:$true] %s1352_s9 }
  0x6e   : > { %p1702_p5 = pnand %p1701_p3, %p1697_p0 }
  0x77   : > { %v506_v4 = vpop.permute.xlu2 %505 }
  0x7f   : > { %v508_v5 = vpop.permute.xlu2 %507 }
  0x80   : > { %v514_v17 = vsel %vm513_vm2, %v506_v4, %v508_v5 }
  0x87   : > { %v612_v6 = vpop.permute.xlu2 %611 }
  0x8e   : > { %v331_v7 = vpop.permute.xlu0 %330  ;;  %v327_v8 = vpop.permute.xlu1 %326 }
  0x8f   : > { %v614_v9 = vpop.permute.xlu2 %613 }
  0x90   : > { %v618_v24 = vsel %vm615_vm4, %v612_v6, %v614_v9  ;;  %v1556_v9 = vld [vmem:[%s2240_s2 + $0x68] sm:$0xff] }
  0x96   : > { %v333_v10 = vpop.permute.xlu0 %332  ;;  %v329_v11 = vpop.permute.xlu1 %328 }
  0x97   : > { %v335_v12 = vsel %vm334_vm0, %v327_v8, %v329_v11  ;;  %v336_v13 = vsel %vm334_vm0, %v329_v11, %v331_v7  ;;  %v337_v14 = vsel %vm334_vm0, %v331_v7, %v333_v10  ;;  %v710_v23 = vpop.permute.xlu2 %709  ;;  %v1566_v10 = vld [vmem:[%s2240_s2 + $0x70] sm:$0xff]  ;;  %v1577_v11 = vld [vmem:[%s2240_s2 + $0x80] sm:$0xff] }
  0x98   : > { %1493 = vmatpush.msk.msra.mxu0 %vm345_vm1, %v335_v12  ;;  %1593 = vmatpush.msk.msra.mxu3 %vm345_vm1, %v335_v12  ;;  %v1567_v12 = vld [vmem:[%s2240_s2 + $0x78] sm:$0xff] }
  0x99   : > { %1496 = vmatpush.msk.msra.mxu1 %vm345_vm1, %v336_v13  ;;  %1499 = vmatpush.msk.msra.mxu2 %vm345_vm1, %v337_v14  ;;  %v1578_v13 = vld [vmem:[%s2240_s2 + $0x88] sm:$0xff] }
  0x9a   : > { %1494 = vmatmul.msk.f32.vlgmr.msra.gmra.mxu0 %vm338_vm3, %v1491_v15  ;;  %1495 = vmatmul.msk.f32.vlgmr.msra.gmra.mxu3 %vm338_vm3, %v1492_v16 }
  0x9b   : > { %1497 = vmatmul.msk.f32.vlgmr.msra.gmra.mxu1 %vm338_vm3, %v1491_v15  ;;  %1500 = vmatmul.msk.f32.vlgmr.msra.gmra.mxu2 %vm338_vm3, %v1491_v15  ;;  %v1798_v15 = vmov 0  }
  0x9c   : > { %1513 = vmatpush.msk.msrb.mxu2 %vm345_vm1, %v514_v17  ;;  %1502 = vmatpush.msk.msrb.mxu3 %vm345_vm1, %v1891_v1 }
  0x9d   : > { %1508 = vmatpush.msk.msrb.mxu1 %vm345_vm1, %v1889_v0  ;;  %1505 = vmatpush.msk.msrb.mxu0 %vm345_vm1, %v1899_v3  ;;  %v1555_v3 = vld [vmem:[%s2240_s2 + $0x60] sm:$0xff] }
  0x9e   : > { %v510_v18 = vpop.permute.xlu0 %509  ;;  %v610_v19 = vpop.permute.xlu1 %609  ;;  %1670 = vset.pattern.permute.xlu2 %v1798_v15  ;;  %1671 = vset.pattern.permute.xlu0 %v1798_v15 }
  0x9f   : > { %v515_v20 = vsel %vm513_vm2, %v508_v5, %v510_v18  ;;  %v617_v21 = vsel %vm615_vm4, %v610_v19, %v612_v6  ;;  %v814_v31 = vpop.permute.xlu2 %813 }
  0xa0   : > { %1516 = vmatpush.msk.msra.mxu3 %vm345_vm1, %v515_v20  ;;  %1527 = vmatpush.msk.msra.mxu2 %vm345_vm1, %v617_v21 }
  0xa2   : > { %1503 = vmatmul.msk.f32.vlgmr.msrb.gmra.mxu3 %vm338_vm3, %v317_v22  ;;  %1506 = vmatmul.msk.f32.vlgmr.msrb.gmra.mxu0 %vm338_vm3, %v317_v22 }
  0xa3   : > { %1498 = vmatmul.msk.f32.gmra.mxu1 %vm338_vm3, %v1492_v16  ;;  %1501 = vmatmul.msk.f32.gmra.mxu2 %vm338_vm3, %v1492_v16  ;;  %v1276_v16 = vld [vmem:[%s2241_s3] sm:$0xff] }
  0xa4   : > { %1530 = vmatpush.msk.msrb.mxu3 %vm345_vm1, %v618_v24  ;;  %1279 = vperm.xlu2 %1670, %v1276_v16  }
  0xa6   : > { %v512_v25 = vpop.permute.xlu0 %511  ;;  %v608_v26 = vpop.permute.xlu1 %607 }
  0xa7   : > { %v516_v27 = vsel %vm513_vm2, %v510_v18, %v512_v25  ;;  %v616_v28 = vsel %vm615_vm4, %v608_v26, %v610_v19  ;;  %v816_v36 = vpop.permute.xlu2 %815 }
  0xa8   : > { %1519 = vmatpush.msk.msra.mxu0 %vm345_vm1, %v516_v27  ;;  %1524 = vmatpush.msk.msra.mxu1 %vm345_vm1, %v616_v28  ;;  %v821_v39 = vsel %vm819_vm6, %v814_v31, %v816_v36 }
  0xaa   : > { %1504 = vmatmul.msk.f32.gmra.mxu3 %vm338_vm3, %v318_v29  ;;  %1507 = vmatmul.msk.f32.gmra.mxu0 %vm338_vm3, %v318_v29 }
  0xab   : > { %1509 = vmatmul.msk.f32.vlgmr.msrb.gmra.mxu1 %vm338_vm3, %v317_v22  ;;  %1514 = vmatmul.msk.f32.vlgmr.msrb.gmra.mxu2 %vm338_vm3, %v1511_v30 }
  0xae   : > { %v714_v32 = vpop.permute.xlu0 %713  ;;  %v716_v33 = vpop.permute.xlu1 %715 }
  0xaf   : > { %v720_v34 = vsel %vm717_vm5, %v714_v32, %v716_v33  ;;  %v1018_v44 = vpop.permute.xlu2 %1017 }
  0xb0   : > { %1541 = vmatpush.msk.msrb.mxu2 %vm345_vm1, %v720_v34 }
  0xb2   : > { %1517 = vmatmul.msk.f32.vlgmr.msra.gmra.mxu3 %vm338_vm3, %v1511_v30  ;;  %1520 = vmatmul.msk.f32.vlgmr.msra.gmra.mxu0 %vm338_vm3, %v1511_v30 }
  0xb3   : > { %1510 = vmatmul.msk.f32.gmra.mxu1 %vm338_vm3, %v318_v29  ;;  %1515 = vmatmul.msk.f32.gmra.mxu2 %vm338_vm3, %v1512_v35 }
  0xb6   : > { %v712_v37 = vpop.permute.xlu0 %711  ;;  %v812_v38 = vpop.permute.xlu1 %811 }
  0xb7   : > { %v718_v40 = vsel %vm717_vm5, %v710_v23, %v712_v37  ;;  %v719_v41 = vsel %vm717_vm5, %v712_v37, %v714_v32  ;;  %v820_v42 = vsel %vm819_vm6, %v812_v38, %v814_v31  ;;  %v1016_v50 = vpop.permute.xlu2 %1015 }
  0xb8   : > { %1538 = vmatpush.msk.msrb.mxu1 %vm345_vm1, %v719_v41  ;;  %1535 = vmatpush.msk.msrb.mxu0 %vm345_vm1, %v718_v40  ;;  %v1024_v56 = vsel %vm1023_vm8, %v1016_v50, %v1018_v44 }
  0xb9   : > { %1546 = vmatpush.msk.msra.mxu3 %vm345_vm1, %v820_v42 }
  0xba   : > { %1549 = vmatpush.msk.msra.mxu0 %vm345_vm1, %v821_v39  ;;  %1518 = vmatmul.msk.f32.gmra.mxu3 %vm338_vm3, %v1512_v35 }
  0xbb   : > { %1521 = vmatmul.msk.f32.gmra.mxu0 %vm338_vm3, %v1512_v35  ;;  %1525 = vmatmul.msk.f32.vlgmr.msra.gmra.mxu1 %vm338_vm3, %v1522_v43 }
  0xbc   : > { %1528 = vmatmul.msk.f32.vlgmr.msra.gmra.mxu2 %vm338_vm3, %v1522_v43 }
  0xbe   : > { %v914_v45 = vpop.permute.xlu0 %913  ;;  %v916_v46 = vpop.permute.xlu1 %915 }
  0xbf   : > { %v922_v47 = vsel %vm921_vm7, %v914_v45, %v916_v46  ;;  %v1124_v62 = vpop.permute.xlu2 %1123 }
  0xc0   : > { %1557 = vmatpush.msk.msra.mxu2 %vm345_vm1, %v922_v47 }
  0xc2   : > { %1531 = vmatmul.msk.f32.vlgmr.msrb.gmra.mxu3 %vm338_vm3, %v1522_v43 }
  0xc3   : > { %1536 = vmatmul.msk.f32.vlgmr.msrb.gmra.mxu0 %vm338_vm3, %v1533_v48  ;;  %1526 = vmatmul.msk.f32.gmra.mxu1 %vm338_vm3, %v1523_v49 }
  0xc4   : > { %1529 = vmatmul.msk.f32.gmra.mxu2 %vm338_vm3, %v1523_v49 }
  0xc6   : > { %v818_v51 = vpop.permute.xlu0 %817  ;;  %v918_v52 = vpop.permute.xlu1 %917 }
  0xc7   : > { %v822_v53 = vsel %vm819_vm6, %v816_v36, %v818_v51  ;;  %v923_v54 = vsel %vm921_vm7, %v916_v46, %v918_v52 }
  0xc8   : > { %1560 = vmatpush.msk.msrb.mxu3 %vm345_vm1, %v923_v54  ;;  %1552 = vmatpush.msk.msra.mxu1 %vm345_vm1, %v822_v53 }
  0xca   : > { %1532 = vmatmul.msk.f32.gmra.mxu3 %vm338_vm3, %v1523_v49 }
  0xcb   : > { %1537 = vmatmul.msk.f32.gmra.mxu0 %vm338_vm3, %v1534_v55  ;;  %1539 = vmatmul.msk.f32.vlgmr.msrb.gmra.mxu1 %vm338_vm3, %v1533_v48 }
  0xcc   : > { %1542 = vmatmul.msk.f32.vlgmr.msrb.gmra.mxu2 %vm338_vm3, %v1533_v48  ;;  %1568 = vmatpush.msk.msrb.mxu1 %vm345_vm1, %v1024_v56 }
  0xce   : > { %v1020_v57 = vpop.permute.xlu0 %1019  ;;  %v920_v58 = vpop.permute.xlu1 %919 }
  0xcf   : > { %v1025_v59 = vsel %vm1023_vm8, %v1018_v44, %v1020_v57  ;;  %v924_v61 = vsel %vm921_vm7, %v918_v52, %v920_v58 }
  0xd0   : > { %1563 = vmatpush.msk.msrb.mxu0 %vm345_vm1, %v924_v61  ;;  %1571 = vmatpush.msk.msrb.mxu2 %vm345_vm1, %v1025_v59 }
  0xd2   : > { %1547 = vmatmul.msk.f32.vlgmr.msra.gmra.mxu3 %vm338_vm3, %v1544_v60 }
  0xd3   : > { %1550 = vmatmul.msk.f32.vlgmr.msra.gmra.mxu0 %vm338_vm3, %v1544_v60  ;;  %1540 = vmatmul.msk.f32.gmra.mxu1 %vm338_vm3, %v1534_v55 }
  0xd4   : > { %1543 = vmatmul.msk.f32.gmra.mxu2 %vm338_vm3, %v1534_v55 }
  0xd6   : > { %v1022_v63 = vpop.permute.xlu0 %1021  ;;  %v1122_v0 = vpop.permute.xlu1 %1121 }
  0xd7   : > { %v1026_v1 = vsel %vm1023_vm8, %v1020_v57, %v1022_v63  ;;  %v1128_v4 = vsel %vm1125_vm9, %v1122_v0, %v1124_v62 }
  0xd8   : > { %1574 = vmatpush.msk.msra.mxu3 %vm345_vm1, %v1026_v1 }
  0xda   : > { %1548 = vmatmul.msk.f32.gmra.mxu3 %vm338_vm3, %v1545_v2 }
  0xdb   : > { %1551 = vmatmul.msk.f32.gmra.mxu0 %vm338_vm3, %v1545_v2  ;;  %1553 = vmatmul.msk.f32.vlgmr.msra.gmra.mxu1 %vm338_vm3, %v1544_v60 }
  0xdc   : > { %1558 = vmatmul.msk.f32.vlgmr.msra.gmra.mxu2 %vm338_vm3, %v1555_v3 }
  0xdd   : > { %1585 = vmatpush.msk.msra.mxu2 %vm345_vm1, %v1128_v4 }
  0xde   : > { %v1120_v5 = vpop.permute.xlu1 %1119  ;;  %v1118_v6 = vpop.permute.xlu0 %1117 }
  0xdf   : > { %v1127_v7 = vsel %vm1125_vm9, %v1120_v5, %v1122_v0  ;;  %v1126_v8 = vsel %vm1125_vm9, %v1118_v6, %v1120_v5 }
  0xe0   : > { %1582 = vmatpush.msk.msra.mxu1 %vm345_vm1, %v1127_v7  ;;  %1579 = vmatpush.msk.msra.mxu0 %vm345_vm1, %v1126_v8  ;;  %vm1307_vm1 = vcmask 1041408  }
  0xe2   : > { %1561 = vmatmul.msk.f32.vlgmr.msrb.gmra.mxu3 %vm338_vm3, %v1555_v3 }
  0xe3   : > { %1564 = vmatmul.msk.f32.vlgmr.msrb.gmra.mxu0 %vm338_vm3, %v1555_v3  ;;  %1554 = vmatmul.msk.f32.gmra.mxu1 %vm338_vm3, %v1545_v2 }
  0xe4   : > { %1559 = vmatmul.msk.f32.gmra.mxu2 %vm338_vm3, %v1556_v9 }
  0xea   : > { %1562 = vmatmul.msk.f32.gmra.mxu3 %vm338_vm3, %v1556_v9 }
  0xeb   : > { %1565 = vmatmul.msk.f32.gmra.mxu0 %vm338_vm3, %v1556_v9  ;;  %1569 = vmatmul.msk.f32.vlgmr.msrb.gmra.mxu1 %vm338_vm3, %v1566_v10 }
  0xec   : > { %1572 = vmatmul.msk.f32.vlgmr.msrb.gmra.mxu2 %vm338_vm3, %v1566_v10 }
  0xf2   : > { %1575 = vmatmul.msk.f32.vlgmr.msra.gmra.mxu3 %vm338_vm3, %v1566_v10 }
  0xf3   : > { %1580 = vmatmul.msk.f32.vlgmr.msra.gmra.mxu0 %vm338_vm3, %v1577_v11  ;;  %1570 = vmatmul.msk.f32.gmra.mxu1 %vm338_vm3, %v1567_v12 }
  0xf4   : > { %1573 = vmatmul.msk.f32.gmra.mxu2 %vm338_vm3, %v1567_v12 }
  0xfa   : > { %1576 = vmatmul.msk.f32.gmra.mxu3 %vm338_vm3, %v1567_v12 }
  0xfb   : > { %1581 = vmatmul.msk.f32.gmra.mxu0 %vm338_vm3, %v1578_v13  ;;  %1583 = vmatmul.msk.f32.vlgmr.msra.gmra.mxu1 %vm338_vm3, %v1577_v11 }
  0xfc   : > { %1586 = vmatmul.msk.f32.vlgmr.msra.gmra.mxu2 %vm338_vm3, %v1577_v11 }
 0x103   : > { %1584 = vmatmul.msk.f32.gmra.mxu1 %vm338_vm3, %v1578_v13 }
 0x104   : > { %1587 = vmatmul.msk.f32.gmra.mxu2 %vm338_vm3, %v1578_v13 }
 0x117   : > { %v369_v14 = vpop.f32.mrf.mxu0 }
 0x118   : > { %v392_v17 = vpop.f32.mrf.mxu1 }
 0x11d   : > { %v372_v18 = vpop.f32.mrf.mxu3 }
 0x11e   : > { %v415_v19 = vpop.f32.mrf.mxu2 }
 0x11f   : > { %v473_v20 = vpop.f32.mrf.mxu0 }
 0x120   : > { %v395_v21 = vpop.f32.mrf.mxu1  ;;  %v474_v22 = vadd.f32 %v473_v20, %v392_v17 }
 0x125   : > { %v450_v23 = vpop.f32.mrf.mxu3 }
 0x126   : > { %v418_v24 = vpop.f32.mrf.mxu2  ;;  %v451_v25 = vadd.f32 %v450_v23, %v369_v14 }
 0x127   : > { %v476_v26 = vpop.f32.mrf.mxu0 }
 0x128   : > { %v477_v27 = vadd.f32 %v476_v26, %v395_v21  ;;  %v496_v28 = vpop.f32.mrf.mxu1 }
 0x129   : > { %v497_v29 = vadd.f32 %v496_v28, %v415_v19 }
 0x12d   : > { %v453_v30 = vpop.f32.mrf.mxu3 }
 0x12e   : > { %v546_v31 = vpop.f32.mrf.mxu2  ;;  %v454_v10 = vadd.f32 %v453_v30, %v372_v18 }
 0x12f   : > { %v598_v32 = vadd.f32 %v546_v31, %v451_v25  ;;  %v592_v33 = vpop.f32.mrf.mxu0 }
 0x130   : > { %v499_v34 = vpop.f32.mrf.mxu1  ;;  %v600_v35 = vadd.f32 %v592_v33, %v497_v29 }
 0x131   : > { %v500_v36 = vadd.f32 %v499_v34, %v418_v24 }
 0x135   : > { %v569_v37 = vpop.f32.mrf.mxu3 }
 0x136   : > { %v549_v38 = vpop.f32.mrf.mxu2  ;;  %v599_v39 = vadd.f32 %v569_v37, %v474_v22 }
 0x137   : > { %v601_v11 = vadd.f32 %v549_v38, %v454_v10 }
 0x138   : > { %v595_v40 = vpop.f32.mrf.mxu0  ;;  %v648_v42 = vpop.f32.mrf.mxu1 }
 0x139   : > { %v603_v41 = vadd.f32 %v595_v40, %v500_v36  ;;  %v700_v43 = vadd.f32 %v648_v42, %v598_v32 }
 0x13d   : > { %v572_v44 = vpop.f32.mrf.mxu3 }
 0x13e   : > { %v602_v22 = vadd.f32 %v572_v44, %v477_v27 }
 0x13f   : > { %v671_v45 = vpop.f32.mrf.mxu2 }
 0x140   : > { %v701_v46 = vadd.f32 %v671_v45, %v599_v39  ;;  %v750_v47 = vpop.f32.mrf.mxu0  ;;  %v651_v48 = vpop.f32.mrf.mxu1 }
 0x141   : > { %v2081_v49 = vadd.f32 %v750_v47, %v700_v43  ;;  %v703_v12 = vadd.f32 %v651_v48, %v601_v11 }
 0x145   : > { %v694_v50 = vpop.f32.mrf.mxu3 }
 0x146   : > { %v702_v52 = vadd.f32 %v694_v50, %v600_v35 }
 0x147   : > { %v674_v51 = vpop.f32.mrf.mxu2 }
 0x148   : > { %v753_v53 = vpop.f32.mrf.mxu0  ;;  %v773_v54 = vpop.f32.mrf.mxu1  ;;  %v704_v25 = vadd.f32 %v674_v51, %v602_v22 }
 0x149   : > { %v803_v55 = vadd.f32 %v773_v54, %v701_v46  ;;  %v805_v17 = vadd.f32 %v753_v53, %v703_v12 }
 0x14d   : > { %v697_v56 = vpop.f32.mrf.mxu3 }
 0x14e   : > { %v705_v34 = vadd.f32 %v697_v56, %v603_v41  ;;  %v1310_v56 = vlaneseq }
 0x14f   : > { %v796_v57 = vpop.f32.mrf.mxu2 }
 0x150   : > { %v2083_v58 = vadd.f32 %v796_v57, %v702_v52  ;;  %v875_v59 = vpop.f32.mrf.mxu0  ;;  %v776_v60 = vpop.f32.mrf.mxu1  ;;  %vm2133_vm3 = vcmp.lt.s32.totalorder %v1310_v56, 384 }
 0x151   : > { %v2085_v61 = vadd.f32 %v875_v59, %v803_v55  ;;  %v806_v30 = vadd.f32 %v776_v60, %v704_v25 }
 0x155   : > { %v852_v62 = vpop.f32.mrf.mxu3 }
 0x156   : > { %v904_v50 = vadd.f32 %v852_v62, %v2081_v49 }
 0x157   : > { %v799_v63 = vpop.f32.mrf.mxu2 }
 0x158   : > { %v878_v0 = vpop.f32.mrf.mxu0  ;;  %v2087_v1 = vpop.f32.mrf.mxu1  ;;  %v807_v37 = vadd.f32 %v799_v63, %v705_v34 }
 0x159   : > { %v908_v31 = vadd.f32 %v878_v0, %v806_v30 }
 0x15d   : > { %v855_v2 = vpop.f32.mrf.mxu3 }
 0x15e   : > { %v907_v20 = vadd.f32 %v855_v2, %v805_v17 }
 0x15f   : > { %v954_v3 = vpop.f32.mrf.mxu2 }
 0x160   : > { %v2089_v4 = vpop.f32.mrf.mxu0  ;;  %v901_v5 = vpop.f32.mrf.mxu1  ;;  %v1006_v57 = vadd.f32 %v954_v3, %v904_v50 }
 0x161   : > { %v909_v40 = vadd.f32 %v901_v5, %v807_v37 }
 0x165   : > { %v2091_v6 = vpop.f32.mrf.mxu3 }
 0x167   : > { %v957_v7 = vpop.f32.mrf.mxu2 }
 0x168   : > { %v1003_v8 = vpop.f32.mrf.mxu0  ;;  %v2093_v9 = vpop.f32.mrf.mxu1  ;;  %v1009_v21 = vadd.f32 %v957_v7, %v907_v20 }
 0x169   : > { %v1011_v44 = vadd.f32 %v1003_v8, %v909_v40  ;;  %v1108_v0 = vadd.f32 %v2093_v9, %v1006_v57 }
 0x16d   : > { %v980_v13 = vpop.f32.mrf.mxu3 }
 0x16e   : > { %v1010_v27 = vadd.f32 %v980_v13, %v908_v31 }
 0x16f   : > { %v2095_v14 = vpop.f32.mrf.mxu2 }
 0x170   : > { %v2097_v16 = vpop.f32.mrf.mxu0  ;;  %v1059_v19 = vpop.f32.mrf.mxu1 }
 0x171   : > { %v1111_v23 = vadd.f32 %v1059_v19, %v1009_v21  ;;  %v1210_v13 = vadd.f32 %v2097_v16, %v1108_v0  ;;  %v2151_v19 = vpop.permute.xlu2 %1279 }
 0x175   : > { %v2099_v28 = vpop.f32.mrf.mxu3 }
 0x177   : > { %v1082_v24 = vpop.f32.mrf.mxu2 }
 0x178   : > { %v1161_v26 = vpop.f32.mrf.mxu0  ;;  %v2101_v18 = vpop.f32.mrf.mxu1  ;;  %v1112_v38 = vadd.f32 %v1082_v24, %v1010_v27 }
 0x179   : > { %v1213_v29 = vadd.f32 %v1161_v26, %v1111_v23 }
 0x17b   : > { %vm1216_vm10 = vcmp.gt.f32.partialorder %v1213_v29, 0.0  ;;  %vm1219_vm11 = vcmp.eq.f32.partialorder %v1213_v29, 0.0 }
 0x17c   : > { %v1222_v32 = vsel %vm1216_vm10, 1.0, %v1213_v29  ;;  %v1285_v10 = vsel %vm1219_vm11, 1, %v1798_v15 }
 0x17d   : > { %v1225_v33 = vsel %vm1219_vm11, 1.0, %v1222_v32  ;;  %v1105_v43 = vpop.f32.mrf.mxu3  ;;  %v1288_v22 = vperm.slane %v1285_v10, 0 }
 0x17e   : > { %v1228_v35 = vperm.slane %v1225_v33, 0  ;;  %v1113_v46 = vadd.f32 %v1105_v43, %v1011_v44 }
 0x17f   : > { %v2104_v36 = vpop.f32.mrf.mxu2 }
 0x180   : > { %1672 = vrcp.f32 %v1228_v35  ;;  %v1184_v39 = vpop.f32.mrf.mxu1  ;;  %v1242_v49 = vand.u32 2147483648, %v1228_v35  ;;  %v1240_v63 = vand.u32 2147483647, %v1228_v35  ;;  %vm1236_vm4 = vweird.f32 %v1228_v35 }
 0x181   : > { %v2106_v42 = vadd.f32 %v1184_v39, %v1112_v38 }
 0x182   : > { %v1243_v9 = vor.u32 1.1754944e-38, %v1242_v49  ;;  %vm1241_vm6 = vcmp.eq.f32.partialorder %v1240_v63, 8.507059e+37 }
 0x183   : > { %vm1217_vm12 = vcmp.gt.f32.partialorder %v2106_v42, 0.0  ;;  %vm1220_vm13 = vcmp.eq.f32.partialorder %v2106_v42, 0.0 }
 0x184   : > { %v1223_v41 = vsel %vm1217_vm12, 1.0, %v2106_v42 }
 0x185   : > { %v1226_v47 = vsel %vm1220_vm13, 1.0, %v1223_v41  ;;  %v1303_v48 = vrot.slane %v1223_v41, 7 }
 0x186   : > { %v1673_v45 = vpop.eup %1672  ;;  %v2119_v51 = vperm.slane %v1226_v47, 0 }
 0x187   : > { %v1207_v52 = vpop.f32.mrf.mxu2  ;;  %v1232_v53 = vmul.f32 %v1673_v45, %v1228_v35  ;;  %v1306_v55 = vsel %vm1305_vm14, %v1222_v32, %v1303_v48  ;;  %vm1237_vm2 = vweird.f32 %v1673_v45 }
 0x188   : > { %v2124_v54 = vadd.f32 %v1207_v52, %v1113_v46  ;;  %1674 = vrcp.f32 %v2119_v51  ;;  %vm1238_vm5 = vmor %vm1236_vm4, %vm1237_vm2 }
 0x189   : > { %v1233_v59 = vsub.f32 1.0, %v1232_v53 }
 0x18a   : > { %vm1218_vm15 = vcmp.gt.f32.partialorder %v2124_v54, 0.0  ;;  %vm1221_vm0 = vcmp.eq.f32.partialorder %v2124_v54, 0.0 }
 0x18b   : > { %v1224_v60 = vsel %vm1218_vm15, 1.0, %v2124_v54  ;;  %v1234_v62 = vmul.f32 %v1673_v45, %v1233_v59 }
 0x18c   : > { %v1227_v2 = vsel %vm1221_vm0, 1.0, %v1224_v60  ;;  %v1304_v3 = vrot.slane %v1224_v60, 6 }
 0x18d   : > { %v2137_v7 = vperm.slane %v1227_v2, 0  ;;  %v1235_v8 = vadd.f32 %v1673_v45, %v1234_v62 }
 0x18e   : > { %v1308_v11 = vsel %vm1307_vm1, %v1306_v55, %v1304_v3  ;;  %v1675_v12 = vpop.eup %1674 }
 0x18f   : > { %1676 = vrcp.f32 %v2137_v7  ;;  %v1239_v17 = vsel %vm1238_vm5, %v1673_v45, %v1235_v8  ;;  %1314 = vst.msk [vmem:[%s288_s8] sm:$0x7] %vm2133_vm3, %v1308_v11  ;;  %v1247_v21 = vmul.f32 %v1675_v12, %v2119_v51 }
 0x190   : > { %v1244_v20 = vsel %vm1241_vm6, %v1243_v9, %v1239_v17 }
 0x191   : > { %1705 = shalt.err (!%p1702_p5)
}
 0x192   : > { %1601 = dma.vmem_to_hbm [thread:$0]  (%p1869_p4), %s2141_s9, 48, %s2143_s10, %s1321_s12   ;;  %v1245_v16 = vmul.f32 %v1244_v20, %v1210_v13  ;;  %v1248_v23 = vsub.f32 1.0, %v1247_v21  ;;  %v1007_v24 = vadd.f32 %v2091_v6, %v2085_v61  ;;  %v1257_v25 = vand.u32 2147483648, %v2119_v51 }
 0x193   : > { %vm1252_vm7 = vweird.f32 %v1675_v12  ;;  %v1255_v30 = vand.u32 2147483647, %v2119_v51  ;;  %vm1291_vm8 = vcmp.eq.s32.totalorder %v1288_v22, 1  ;;  %vm1251_vm9 = vweird.f32 %v2119_v51  ;;  %s2181_s29 = scalar_lea.vmem [#allocation2], %s1594_s11  ;;  %s1598_s7 = smul.u32 24, %s1780_s21 }
 0x194   : > { %v1282_v26 = vadd.f32 %v2151_v19, %v1245_v16  ;;  %v1249_v29 = vmul.f32 %v1675_v12, %v1248_v23  ;;  %v1109_v32 = vadd.f32 %v2095_v14, %v1007_v24  ;;  %v1286_v61 = vsel %vm1220_vm13, 1, %v1798_v15  ;;  %vm1253_vm10 = vmor %vm1251_vm9, %vm1252_vm7  ;;  %s1336_s10 = sshll.u32 %s2181_s29, 4  ;;  %s1316_s12 = scalar_lea.sflag [#allocation3], %s2109_s17  ;;  %s1337_s10 = int_to_ptr.vmem [resolvable:$true] %s1336_s10 }
 0x195   : > { %v1677_v31 = vpop.eup %1676  ;;  %v906_v6 = vadd.f32 %v2087_v1, %v2083_v58  ;;  %v1258_v14 = vor.u32 1.1754944e-38, %v1257_v25  ;;  %vm1256_vm11 = vcmp.eq.f32.partialorder %v1255_v30, 8.507059e+37  ;;  %v1272_v42 = vand.u32 2147483648, %v2137_v7  ;;  %s1334_s9 = scalar_lea.hbm %s2242_s4, %s1598_s7  ;;  %s1726_s24 = scalar_lea.hbm %s2242_s4, 48 }
 0x196   : > { %v1294_v33 = vsel %vm1291_vm8, 0.0, %v1282_v26  ;;  %v1250_v34 = vadd.f32 %v1675_v12, %v1249_v29  ;;  %v1262_v27 = vmul.f32 %v1677_v31, %v2137_v7  ;;  %v1211_v35 = vadd.f32 %v2101_v18, %v1109_v32  ;;  %s1338_s11 = sshll.u32 %s1334_s9, 4  ;;  %s1339_s11 = int_to_ptr.hbm [resolvable:$true] %s1338_s11 }
 0x197   : > { %1297 = vst [vmem:[%s2181_s29] sm:$0xff] %v1294_v33  ;;  %v1008_v39 = vadd.f32 %v2089_v4, %v906_v6  ;;  %v1289_v43 = vperm.slane %v1286_v61, 0  ;;  %vm1267_vm12 = vweird.f32 %v1677_v31  ;;  %v1270_v45 = vand.u32 2147483647, %v2137_v7  ;;  %s1720_s13 = sshra.s32 %s1339_s11, 4  ;;  %s1721_s13 = int_to_ptr.hbm [resolvable:$true] %s1720_s13 }
 0x198   : > { %v1254_v37 = vsel %vm1253_vm10, %v1675_v12, %v1250_v34  ;;  %v1263_v38 = vsub.f32 1.0, %v1262_v27  ;;  %vm1266_vm13 = vweird.f32 %v2137_v7  ;;  %v1287_v4 = vsel %vm1221_vm0, 1, %v1798_v15  ;;  %s1722_s14 = scalar_lea.hbm %s1721_s13, 24  ;;  %p1727_p10 = scmp.lt.s32.totalorder %s1721_s13, %s2242_s4 }
 0x199   : > { %v1259_v40 = vsel %vm1256_vm11, %v1258_v14, %v1254_v37  ;;  %v1110_v58 = vadd.f32 %v2099_v28, %v1008_v39  ;;  %vm1268_vm14 = vmor %vm1266_vm13, %vm1267_vm12  ;;  %v1273_v46 = vor.u32 1.1754944e-38, %v1272_v42  ;;  %vm1292_vm15 = vcmp.eq.s32.totalorder %v1289_v43, 1  ;;  %p1723_p6 = scmp.ne.s32.totalorder %s1721_s13, %s1722_s14  ;;  %p1728_p11 = scmp.lt.s32.totalorder %s1726_s24, %s1722_s14 }
 0x19a   : > { %v1260_v44 = vmul.f32 %v1259_v40, %v1211_v35  ;;  %v1264_v41 = vmul.f32 %v1677_v31, %v1263_v38  ;;  %vm1271_vm1 = vcmp.eq.f32.partialorder %v1270_v45, 8.507059e+37  ;;  %v1290_v51 = vperm.slane %v1287_v4, 0 }
 0x19b   : > { %v1212_v28 = vadd.f32 %v2104_v36, %v1110_v58  ;;  %p1724_p7 = pnand %p1723_p6, %p1869_p4  ;;  %p1729_p12 = por %p1728_p11, %p1727_p10 }
 0x19c   : > { %v1265_v1 = vadd.f32 %v1677_v31, %v1264_v41  ;;  %v1283_v18 = vadd.f32 %v2151_v19, %v1260_v44  ;;  %vm1293_vm0 = vcmp.eq.s32.totalorder %v1290_v51, 1 }
 0x19d   : > { %p1725_p9 = pneg %p1724_p7 }
 0x19e   : > { %v1269_v47 = vsel %vm1268_vm14, %v1677_v31, %v1265_v1  ;;  %v1295_v48 = vsel %vm1292_vm15, 0.0, %v1283_v18 }
 0x19f   : > { %v1274_v50 = vsel %vm1271_vm1, %v1273_v46, %v1269_v47  ;;  %1298 = vst [vmem:[%s2181_s29 + $0x8] sm:$0xff] %v1295_v48  ;;  %p1730_p13 = pnand %p1729_p12, %p1725_p9 }
 0x1a0   : > { %v1275_v52 = vmul.f32 %v1274_v50, %v1212_v28 }
 0x1a2   : > { %v1284_v15 = vadd.f32 %v2151_v19, %v1275_v52 }
 0x1a4   : > { %v1296_v53 = vsel %vm1293_vm0, 0.0, %v1284_v15 }
 0x1a5   : > { %1299 = vst [vmem:[%s2181_s29 + $0x10] sm:$0xff] %v1296_v53 }
 0x1a6   : > { %1733 = shalt.err (!%p1730_p13)
}
 0x1a7   : > { %1600 = dma.vmem_to_hbm [thread:$0]  (%p1869_p4), %s1337_s10, 384, %s1339_s11, %s1316_s12  }
 0x1a8 PF: > { %p1612_p0 = scmp.ge.s32.totalorder %s1788_s23, 2  ;;  %s1366_s17 = sand.u32 1, %s1768_s18  }
 0x1a9   : > { %s1367_s29 = scalar_lea.sflag [#allocation3], %s1366_s17 }
 0x1aa   : > { %p1605_p1 = pnand %p1612_p0, %p1876_p8 }
 0x1ac   : > { %p1606_p2 = pneg %p1605_p1 }
 0x1ae   : > { %1759 = dma.done.wait (%p1606_p2), %s1367_s29, 384  }
 0x1af   : > { %1761 = vsyncadd (%p1606_p2), %s1367_s29, 4294966912  ;;  %s1377_s7 = scalar_lea.sflag [#allocation5], %s1366_s17 }
 0x1b0   : > { %1763 = dma.done.wait (%p1606_p2), %s1377_s7, 48  }
 0x1b1   : > { %1765 = vsyncadd (%p1606_p2), %s1377_s7, 4294967248  ;;  %s22_s23 = sadd.s32 1, %s1788_s23   ;;  %s2248_s18 = smov %s1772_s19 }
 0x1b2   : > { %p19_p3 = scmp.ge.s32.totalorder %s22_s23, 4   ;;  %s2249_s19 = smov %s1776_s20 }
 0x1b3   : > { %s2250_s20 = smov %s1882_s6  ;;  %s2251_s21 = smov %s1784_s22 }
 0x1b4   : > { %s2252_s22 = smov %s2254_s26  ;;  %21 = sbr.rel (!%p19_p3) target bundleno = 6 (0x6), region = 99 }
 0x1b9   :  { %1383 = vsyncpa [#allocation3], 1 }
 0x1ba   :  { %1385 = vsyncpa [#allocation3 + $0x1], 1 }
 0x1bb   :  { %1386 = vsyncpa [#allocation5], 1 }
 0x1bc   :  { %1388 = vsyncpa [#allocation5 + $0x1], 1 }

</bundles_post_ra>
